<compile_context>
chip_gen: v7x
topology: tpu7x:2x2x1
jax: 0.10.0
libtpu: 0.0.40
codegen_flags: <defaults>
</compile_context>

<pallas_src>
import functools

import jax
import jax.numpy as jnp
from jax.experimental import pallas as pl
from jax.experimental.pallas import tpu as pltpu


def _round_up(x, m):
    return ((x + m - 1) // m) * m


def _mse_vel_kernel(pred_ref, obs_ref, fut_ref, out_ref, *,
                    feat_dim, total_rows, block_rows):
    # pred_ref / fut_ref : (b_tile, T_fut*D)   lane-dense blocks
    # obs_ref            : (b_tile, D)         last observed pose only
    pred = pred_ref[...].astype(jnp.float32)
    fut = fut_ref[...].astype(jnp.float32)
    obs = obs_ref[...].astype(jnp.float32)

    bt, flat = pred.shape

    # Row mask for the (possibly partial) last block: rows >= rows_left hold
    # unspecified data and must not contribute to the sum.
    i = pl.program_id(0)
    rows_left = total_rows - i * block_rows
    row = jax.lax.broadcasted_iota(jnp.int32, (bt, 1), 0)
    row_ok = row < rows_left                                   # (bt, 1)

    # prev[:, l] = fut[:, l - D] for lanes l >= D (lanes < D wrap and are masked).
    prev = pltpu.roll(fut, shift=feat_dim, axis=1)
    lane = jax.lax.broadcasted_iota(jnp.int32, (1, flat), 1)   # (1, L) -> broadcast
    ok = jnp.logical_and(lane >= feat_dim, row_ok)             # (bt, L)

    # Mask BEFORE squaring so garbage rows / wrapped lanes contribute exactly 0.
    diff = jnp.where(ok, pred - fut + prev, 0.0)
    total = jnp.sum(diff * diff)

    # t == 0 fix-up: velocity of the first future frame uses the last observed pose.
    d0 = jnp.where(row_ok, pred[:, :feat_dim] - fut[:, :feat_dim] + obs, 0.0)
    out_ref[0, 0] = total + jnp.sum(d0 * d0)


def mse_vel(pred_vel, observed_pose, future_pose):
    """Returns {'vel_loss': scalar, 'loss': scalar} matching MSEVel.forward."""
    B, T_fut, D = pred_vel.shape
    L = T_fut * D

    # Lane-dense layout: flatten (T_fut, D) onto the lane axis (free, contiguous reshape).
    pred2 = pred_vel.reshape(B, L)
    fut2 = future_pose.reshape(B, L)
    obs_last = observed_pose[:, -1, :]  # (B, D): only row the loss ever reads (tiny slice).

    # Per-input block budget ~4 MiB (f32), but cap the tile so there are >= ~4 grid
    # blocks whenever B allows it (v7x megacore needs >= 2 'parallel' blocks).
    BLOCK_BYTES = 4 * 1024 * 1024
    rows_for_budget = max(8, ((BLOCK_BYTES // (4 * L)) // 8) * 8)
    min_blocks_target = 4
    b_tile = max(8, min(rows_for_budget,
                        _round_up(pl.cdiv(B, min_blocks_target), 8)))
    num_blocks = pl.cdiv(B, b_tile)   # NO host-side padding; kernel masks the tail.

    kernel = functools.partial(_mse_vel_kernel, feat_dim=D,
                               total_rows=B, block_rows=b_tile)

    cost = pl.CostEstimate(
        flops=5 * B * T_fut * D,
        transcendentals=0,
        bytes_accessed=(2 * B * T_fut * D + B * D) * 4,
    )

    partials = pl.pallas_call(
        kernel,
        out_shape=jax.ShapeDtypeStruct((num_blocks, 1), jnp.float32),
        grid_spec=pltpu.PrefetchScalarGridSpec(
            num_scalar_prefetch=0,
            grid=(num_blocks,),
            in_specs=[
                pl.BlockSpec((b_tile, L), lambda i: (i, 0)),
                pl.BlockSpec((b_tile, D), lambda i: (i, 0)),
                pl.BlockSpec((b_tile, L), lambda i: (i, 0)),
            ],
            out_specs=pl.BlockSpec((1, 1), lambda i: (i, 0),
                                   memory_space=pltpu.SMEM),
        ),
        compiler_params=pltpu.CompilerParams(
            dimension_semantics=("parallel",),
            vmem_limit_bytes=48 * 1024 * 1024,
        ),
        cost_estimate=cost,
    )(pred2, obs_last, fut2)

    n_elems = jnp.float32(B * T_fut * D)
    vel_loss = jnp.sum(partials) / n_elems
    return {"vel_loss": vel_loss, "loss": vel_loss}


def _reference(pred_vel, observed_pose, future_pose):
    first = (future_pose[..., 0, :] - observed_pose[..., -1, :])[..., None, :]
    rest = future_pose[..., 1:, :] - future_pose[..., :-1, :]
    future_vel = jnp.concatenate([first, rest], axis=-2)
    return jnp.mean((pred_vel.astype(jnp.float32)
                     - future_vel.astype(jnp.float32)) ** 2)


if __name__ == "__main__":
    key = jax.random.PRNGKey(0)
    k1, k2, k3 = jax.random.split(key, 3)

    B, T_obs, T_fut, D = 2, 8, 8, 32
    observed_pose = jax.random.normal(k1, (B, T_obs, D), dtype=jnp.float32)
    future_pose = jax.random.normal(k2, (B, T_fut, D), dtype=jnp.float32)
    pred_vel = jax.random.normal(k3, (B, T_fut, D), dtype=jnp.float32)

    out = mse_vel(pred_vel, observed_pose, future_pose)
    jax.block_until_ready(out["loss"])

    ref = _reference(pred_vel, observed_pose, future_pose)
    assert jnp.allclose(out["loss"], ref, rtol=1e-5, atol=1e-5), (out["loss"], ref)
    assert jnp.allclose(out["vel_loss"], ref, rtol=1e-5, atol=1e-5)

    print("KERNEL_OK")
</pallas_src>

<mosaic_0001>
module attributes {stable_mosaic.version = 11 : i64} {
  func.func @_mse_vel_kernel(%arg0: i32, %arg1: memref<8x256xf32, #tpu.memory_space<vmem>>, %arg2: memref<8x32xf32, #tpu.memory_space<vmem>>, %arg3: memref<8x256xf32, #tpu.memory_space<vmem>>, %arg4: memref<1x1xf32, #tpu.memory_space<smem>>) attributes {dimension_semantics = [#tpu.dimension_semantics<parallel>], iteration_bounds = array<i64: 1>, scalar_prefetch = 0 : i64, scratch_operands = 0 : i64, tpu.core_type = #tpu.core_type<tc>, window_params = [{transform_indices = @transform_0, window_bounds = array<i64: 8, 256>}, {transform_indices = @transform_1, window_bounds = array<i64: 8, 32>}, {transform_indices = @transform_2, window_bounds = array<i64: 8, 256>}, {transform_indices = @transform_3, window_bounds = array<i64: 1, 1>}]} {
    %c0 = arith.constant 0 : index
    %c0_0 = arith.constant 0 : index
    %0 = vector.load %arg1[%c0, %c0_0] : memref<8x256xf32, #tpu.memory_space<vmem>>, vector<8x256xf32>
    %c0_1 = arith.constant 0 : index
    %c0_2 = arith.constant 0 : index
    %1 = vector.load %arg3[%c0_1, %c0_2] : memref<8x256xf32, #tpu.memory_space<vmem>>, vector<8x256xf32>
    %c0_3 = arith.constant 0 : index
    %c0_4 = arith.constant 0 : index
    %2 = vector.load %arg2[%c0_3, %c0_4] : memref<8x32xf32, #tpu.memory_space<vmem>>, vector<8x32xf32>
    %c8_i32 = arith.constant 8 : i32
    %3 = arith.muli %arg0, %c8_i32 : i32
    %c2_i32 = arith.constant 2 : i32
    %4 = arith.subi %c2_i32, %3 : i32
    %5 = tpu.iota {dimensions = array<i32: 0>} : vector<8x1xi32>
    %6 = vector.broadcast %4 : i32 to vector<8x1xi32>
    %7 = arith.cmpi slt, %5, %6 : vector<8x1xi32>
    %c32_i32 = arith.constant 32 : i32
    %8 = tpu.dynamic_rotate %1 by %c32_i32 dim 1 : vector<8x256xf32>, i32 -> vector<8x256xf32>
    %9 = tpu.iota {dimensions = array<i32: 1>} : vector<1x256xi32>
    %c32_i32_5 = arith.constant 32 : i32
    %10 = vector.broadcast %c32_i32_5 : i32 to vector<1x256xi32>
    %11 = arith.cmpi sge, %9, %10 : vector<1x256xi32>
    %12 = vector.broadcast %11 : vector<1x256xi1> to vector<8x256xi1>
    %13 = vector.broadcast %7 : vector<8x1xi1> to vector<8x256xi1>
    %14 = arith.andi %12, %13 : vector<8x256xi1>
    %15 = arith.subf %0, %1 : vector<8x256xf32>
    %16 = arith.addf %15, %8 : vector<8x256xf32>
    %cst = arith.constant 0.000000e+00 : f32
    %17 = vector.broadcast %cst : f32 to vector<8x256xf32>
    %18 = arith.select %14, %16, %17 : vector<8x256xi1>, vector<8x256xf32>
    %19 = arith.mulf %18, %18 : vector<8x256xf32>
    %20 = vector.shape_cast %19 : vector<8x256xf32> to vector<1x8x256xf32>
    %cst_6 = arith.constant dense<0.000000e+00> : vector<1xf32>
    %21 = vector.multi_reduction <add>, %20, %cst_6 [1, 2] : vector<1x8x256xf32> to vector<1xf32>
    %22 = vector.shape_cast %21 : vector<1xf32> to vector<1x1x1xf32>
    %23 = vector.extract %22[0, 0, 0] : f32 from vector<1x1x1xf32>
    %24 = vector.extract_strided_slice %0 {offsets = [0, 0], sizes = [8, 32], strides = [1, 1]} : vector<8x256xf32> to vector<8x32xf32>
    %25 = vector.extract_strided_slice %1 {offsets = [0, 0], sizes = [8, 32], strides = [1, 1]} : vector<8x256xf32> to vector<8x32xf32>
    %26 = arith.subf %24, %25 : vector<8x32xf32>
    %27 = arith.addf %26, %2 : vector<8x32xf32>
    %cst_7 = arith.constant 0.000000e+00 : f32
    %28 = vector.shape_cast %7 : vector<8x1xi1> to vector<8x1xi1>
    %29 = vector.broadcast %28 : vector<8x1xi1> to vector<8x32xi1>
    %30 = vector.broadcast %cst_7 : f32 to vector<8x32xf32>
    %31 = arith.select %29, %27, %30 : vector<8x32xi1>, vector<8x32xf32>
    %32 = arith.mulf %31, %31 : vector<8x32xf32>
    %33 = vector.shape_cast %32 : vector<8x32xf32> to vector<1x8x32xf32>
    %cst_8 = arith.constant dense<0.000000e+00> : vector<1xf32>
    %34 = vector.multi_reduction <add>, %33, %cst_8 [1, 2] : vector<1x8x32xf32> to vector<1xf32>
    %35 = vector.shape_cast %34 : vector<1xf32> to vector<1x1x1xf32>
    %36 = vector.extract %35[0, 0, 0] : f32 from vector<1x1x1xf32>
    %37 = arith.addf %23, %36 : f32
    %c0_9 = arith.constant 0 : index
    %c0_10 = arith.constant 0 : index
    %38 = memref.load %arg4[%c0_9, %c0_10] : memref<1x1xf32, #tpu.memory_space<smem>>
    memref.store %37, %arg4[%c0_9, %c0_10] : memref<1x1xf32, #tpu.memory_space<smem>>
    return
  }
  func.func @transform_0(%arg0: i32) -> (i32, i32) {
    %c0_i32 = arith.constant 0 : i32
    %c0_i32_0 = arith.constant 0 : i32
    return %arg0, %c0_i32 : i32, i32
  }
  func.func @transform_1(%arg0: i32) -> (i32, i32) {
    %c0_i32 = arith.constant 0 : i32
    %c0_i32_0 = arith.constant 0 : i32
    return %arg0, %c0_i32 : i32, i32
  }
  func.func @transform_2(%arg0: i32) -> (i32, i32) {
    %c0_i32 = arith.constant 0 : i32
    %c0_i32_0 = arith.constant 0 : i32
    return %arg0, %c0_i32 : i32, i32
  }
  func.func @transform_3(%arg0: i32) -> (i32, i32) {
    %c0_i32 = arith.constant 0 : i32
    %c0_i32_0 = arith.constant 0 : i32
    return %arg0, %c0_i32 : i32, i32
  }
}

</mosaic_0001>

<bundles_post_ra>
// kernel: tpu_custom_call.1
= control target key start
LH: loop header
LB: loop body
LE: loop exit
PB: predicated region body
PF: predicated region fallthrough
CT: control target
= control target key end

     0   :  { %8 = vsyncpa [#allocation3], 0  ;;  %s366_s0 = inlined_call_operand.hbm [shape: f32[2,256], index: 0, kind: input, shape index: {}]   ;;  %s367_s1 = inlined_call_operand.vmem [shape: f32[2,32], index: 1, kind: input, shape index: {}]   ;;  %s368_s2 = inlined_call_operand.vmem [shape: f32[2,256], index: 2, kind: input, shape index: {}]   ;;  %s369_s3 = inlined_call_operand.hbm [shape: f32[1,1], index: 3, kind: output, shape index: {}]  }
   0x1   :  { %9 = vsyncpa [#allocation4], 0 }
   0x2   :  { %14 = vsyncadd [#allocation3], 192  ;;  %s285_s12 = smov [#allocation2]   ;;  %s249_s16 = scalar_lea.hbm %s366_s0, 64 }
   0x3   :  { %s15_s13 = sshll.u32 %s285_s12, 4  ;;  %p250_p0 = scmp.ne.s32.totalorder %s366_s0, %s249_s16  ;;  %s16_s13 = int_to_ptr.vmem [resolvable:$true] %s15_s13 }
   0x4   :  { %p253_p1 = scmp.lt.u32.totalorder %s249_s16, %s366_s0 }
   0x6   :  { %p255_p2 = pnand %p253_p1, %p250_p0 }
   0x8   :  { %258 = shalt.err (!%p255_p2)
}
   0x9   :  { %s259_s21 = scalar_lea.vmem %s16_s13, 64  ;;  %s263_s22 = scalar_lea.vmem %s16_s13, 256 }
   0xa   :  { %p260_p3 = scmp.ne.s32.totalorder %s16_s13, %s259_s21  ;;  %p264_p4 = scmp.lt.s32.totalorder %s16_s13, %s16_s13 }
   0xb   :  { %p265_p5 = scmp.lt.s32.totalorder %s263_s22, %s259_s21 }
   0xd   :  { %p266_p6 = por %p265_p5, %p264_p4 }
   0xf   :  { %p267_p7 = pnand %p266_p6, %p260_p3 }
  0x11   :  { %270 = shalt.err (!%p267_p7)
}
  0x12   :  { %s286_s23 = smov 64   ;;  %s287_s24 = smov 4  }
  0x13   :  { %21 = dma.hbm_to_vmem [thread:$0]  %s366_s0, 64, %s16_s13, [#allocation3], %s286_s23, %s286_s23, %s287_s24  }
  0x14   :  { %281 = dma.done.wait [#allocation3], 256  }
  0x15   :  { %282 = vsyncadd [#allocation3], 4294967040  ;;  %v40_v0 = vlaneseq  ;;  %v288_v1 = vmov 1983009808   ;;  %v33_v6 = vld [vmem:[%s368_s2] sm:$0xf] }
  0x16   :  { %v51_v2 = vunpack.c.l.s4 %v288_v1  ;;  %v34_v7 = vld [vmem:[%s368_s2 + $0x4] sm:$0xf]  ;;  %v35_v8 = vld [vmem:[%s368_s2 + $0x8] sm:$0xf]  ;;  %v36_v9 = vld [vmem:[%s368_s2 + $0xc] sm:$0xf] }
  0x17   :  { %v323_v3 = vshrl.u32 %v40_v0, 7  ;;  %v37_v10 = vld [vmem:[%s367_s1] sm:$0xff]  ;;  %v48_v11 = vcombine.low %v33_v6, %v34_v7  ;;  %v49_v12 = vcombine.low %v35_v8, %v36_v9  ;;  %v31_v20 = vld [vmem:[#allocation2 + $0x8] sm:$0xf]  ;;  %v32_v21 = vld [vmem:[#allocation2 + $0xc] sm:$0xf] }
  0x18   :  { %v52_v4 = vunpack.c.0.s8 %v51_v2  ;;  %v159_v13 = vcombine.high %v37_v10, %v37_v10  ;;  %v29_v16 = vld [vmem:[#allocation2] sm:$0xf]  ;;  %v30_v17 = vld [vmem:[#allocation2 + $0x4] sm:$0xf]  ;;  %v73_v23 = vand.u32 127, %v40_v0  ;;  %v90_v28 = vsub.f32 %v31_v20, %v35_v8  ;;  %s289_s1 = smov 32  }
  0x19   :  { %v88_v26 = vsub.f32 %v29_v16, %v33_v6  ;;  %v89_v27 = vsub.f32 %v30_v17, %v34_v7  ;;  %v91_v29 = vsub.f32 %v32_v21, %v36_v9  ;;  %vm43_vm0 = vcmp.lt.s32.totalorder %v323_v3, 2  ;;  %s271_s13 = scalar_lea.hbm %s369_s3, 16 }
  0x1a   :  { %v55_v5 = vsub.s32 %v52_v4, %v323_v3  ;;  %vm78_vm1 = vcmp.ge.s32.totalorder %v73_v23, 32  ;;  %vm74_vm3 = vcmp.lt.s32.totalorder %v73_v23, 32  ;;  %vm208_vm4 = vcmask 261120   ;;  %p272_p8 = scmp.ne.s32.totalorder %s369_s3, %s271_s13  ;;  %p275_p9 = scmp.lt.u32.totalorder %s271_s13, %s369_s3 }
  0x1b   :  { %vm344_vm2 = vmand %vm78_vm1, %vm43_vm0 }
  0x1c   :  { %v166_v14 = vrot.slane %v37_v10, %v55_v5  ;;  %v56_v15 = vrot.slane %v48_v11, %v55_v5  ;;  %v63_v18 = vrot.slane %v49_v12, %v55_v5  ;;  %v173_v19 = vrot.slane %v159_v13, %v55_v5  ;;  %p277_p10 = pnand %p275_p9, %p272_p8 }
  0x1e   :  { %v174_v22 = vcombine.high %v166_v14, %v166_v14  ;;  %v64_v24 = vcombine.low %v56_v15, %v63_v18  ;;  %v175_v25 = vcombine.high %v173_v19, %v173_v19  ;;  %v65_v30 = vcombine.high %v56_v15, %v63_v18 }
  0x1f   :  { %v180_v32 = vadd.f32 %v166_v14, %v88_v26  ;;  %v182_v34 = vadd.f32 %v173_v19, %v90_v28 }
  0x20   :  { %68 = vrot.lane.b32.xlu0 %v64_v24, %s289_s1  ;;  %v181_v33 = vadd.f32 %v174_v22, %v89_v27  ;;  %v183_v35 = vadd.f32 %v175_v25, %v91_v29 }
  0x22   :  { %v188_v36 = vcombine.low %v180_v32, %v181_v33  ;;  %v189_v37 = vcombine.low %v182_v34, %v183_v35 }
  0x24   :  { %70 = vrot.lane.b32.xlu0 %v65_v30, %s289_s1  ;;  %v196_v38 = vrot.slane %v188_v36, %v55_v5  ;;  %v203_v39 = vrot.slane %v189_v37, %v55_v5 }
  0x26   :  { %v204_v40 = vcombine.low %v196_v38, %v203_v39 }
  0x28   :  { %v206_v41 = vsel %vm43_vm0, %v204_v40, 0.0 }
  0x29   :  { %v207_v2 = vmul.f32 %v206_v41, %v206_v41 }
  0x2b   :  { %v209_v6 = vsel %vm208_vm4, %v207_v2, 0.0 }
  0x92   :  { %v69_v42 = vpop.permute.xlu0 %68 }
  0x96   :  { %v71_v43 = vpop.permute.xlu0 %70 }
  0x97   :  { %v75_v44 = vsel %vm74_vm3, %v69_v42, %v71_v43  ;;  %v76_v45 = vsel %vm74_vm3, %v71_v43, %v69_v42 }
  0x98   :  { %v94_v46 = vcombine.low %v76_v45, %v75_v44  ;;  %v95_v47 = vcombine.high %v76_v45, %v75_v44 }
  0x9a   :  { %v102_v48 = vrot.slane %v94_v46, %v55_v5  ;;  %v109_v49 = vrot.slane %v95_v47, %v55_v5 }
  0x9c   :  { %v110_v50 = vcombine.high %v102_v48, %v102_v48  ;;  %v111_v51 = vcombine.high %v109_v49, %v109_v49  ;;  %v116_v52 = vadd.f32 %v102_v48, %v88_v26  ;;  %v118_v53 = vadd.f32 %v109_v49, %v90_v28 }
  0x9e   :  { %v117_v54 = vadd.f32 %v110_v50, %v89_v27  ;;  %v119_v55 = vadd.f32 %v111_v51, %v91_v29 }
  0xa0   :  { %v124_v56 = vcombine.low %v116_v52, %v117_v54  ;;  %v125_v57 = vcombine.low %v118_v53, %v119_v55 }
  0xa2   :  { %v132_v58 = vrot.slane %v124_v56, %v55_v5  ;;  %v139_v59 = vrot.slane %v125_v57, %v55_v5 }
  0xa4   :  { %v140_v60 = vcombine.low %v132_v58, %v139_v59  ;;  %v141_v61 = vcombine.high %v132_v58, %v139_v59 }
  0xa6   :  { %v144_v62 = vsel %vm344_vm2, %v140_v60, 0.0  ;;  %v145_v63 = vsel %vm43_vm0, %v141_v61, 0.0 }
  0xa7   :  { %v146_v0 = vmul.f32 %v144_v62, %v144_v62  ;;  %v147_v1 = vmul.f32 %v145_v63, %v145_v63 }
  0xa9   :  { %v148_v4 = vadd.f32 %v147_v1, %v146_v0 }
  0xab   :  { %149 = vadd.xlane.f32.xlu1 %v148_v4 }
  0xaf   :  { %210 = vadd.xlane.f32.xlu1 %v209_v6 }
 0x138   :  { %v150_v7 = vpop.xlane.xlu1 %149 }
 0x139   :  { %v151_v8 = vrot.slane %v150_v7, 4 }
 0x13b   :  { %v152_v9 = vadd.f32 %v151_v8, %v150_v7 }
 0x13c   :  { %v211_v5 = vpop.xlane.xlu1 %210 }
 0x13d   :  { %v153_v10 = vrot.slane %v152_v9, 2  ;;  %v212_v11 = vrot.slane %v211_v5, 4 }
 0x13f   :  { %v213_v12 = vadd.f32 %v212_v11, %v211_v5  ;;  %v154_v13 = vadd.f32 %v153_v10, %v152_v9 }
 0x141   :  { %v214_v14 = vrot.slane %v213_v12, 2  ;;  %v155_v15 = vrot.slane %v154_v13, 1 }
 0x143   :  { %v215_v3 = vadd.f32 %v214_v14, %v213_v12  ;;  %v156_v16 = vadd.f32 %v155_v15, %v154_v13 }
 0x145   :  { %236 = vpush %v156_v16  ;;  %v216_v17 = vrot.slane %v215_v3, 1 }
 0x147   :  { %v217_v18 = vadd.f32 %v216_v17, %v215_v3 }
 0x149   :  { %238 = vpush %v217_v18 }
 0x176   :  { %s237_s2 = spop %236 }
 0x17a   :  { %s239_s9 = spop %238 }
 0x17b   :  { %s219_s10 = sadd.f32 %s239_s9, %s237_s2 }
 0x17d   :  { %221 = sst [smem:[#allocation5]] %s219_s10 }
 0x17e   :  { %280 = shalt.err (!%p277_p10)
}
 0x17f   :  { %s290_s18 = smov [#allocation5]  }
 0x180   :  { %229 = dma.smem_to_hbm %s290_s18, 16, %s369_s3, [#allocation4]  }
 0x181   :  { %283 = dma.done.wait [#allocation4], 16  }
 0x182   :  { %284 = vsyncadd [#allocation4], 4294967280 }
 0x183   :  { %233 = sfence }
 0x184   :  { %234 = vsyncpa [#allocation3], 1 }
 0x185   :  { %235 = vsyncpa [#allocation4], 1 }

</bundles_post_ra>
